<compile_context>
chip_gen: v7x
topology: tpu7x:2x2x1
jax: 0.10.0
libtpu: 0.0.40
codegen_flags: <defaults>
</compile_context>

<pallas_src>
import math
from functools import partial

import jax
import jax.numpy as jnp
from jax.experimental import pallas as pl
from jax.experimental.pallas import tpu as pltpu


# ------------------------------ helpers ------------------------------------ #
def _round_up(x, m):
    return ((x + m - 1) // m) * m


def _n_tile_cap():
    """Lane-tile cap per TPU generation (smaller on 64 MiB-VMEM parts, e.g. v7x)."""
    vmem = 128 * 2 ** 20
    try:
        vmem = int(pltpu.get_tpu_info().vmem_capacity_bytes)
    except Exception:
        pass
    return 1024 if vmem >= 96 * 2 ** 20 else 512


# ----------------------------- Pallas kernel ------------------------------- #
def _make_tap_matmul_kernel(offsets, n_tile):
    """Shift-and-accumulate conv over a flattened-spatial VMEM window.

    x_ref: (1, C_pad, W_LEN)   bf16  input window (output tile + halo)
    w_ref: (T, O_pad, C_pad)   bf16  one (O, C) slice per kernel tap (resident)
    o_ref: (1, O_pad, N_TILE)  f32   output tile (lane-dense, 128-multiple)
    """

    def kernel(x_ref, w_ref, o_ref):
        xw = x_ref[0]                                  # (C_pad, W_LEN) bf16, loaded once
        acc = jnp.zeros(o_ref.shape[1:], jnp.float32)  # (O_pad, N_TILE) f32 in vregs
        for t, off in enumerate(offsets):              # static unroll, T = k*k
            xs = xw[:, off:off + n_tile]               # (C_pad, N_TILE) static lane shift
            acc = acc + jnp.dot(w_ref[t], xs, preferred_element_type=jnp.float32)
        o_ref[0] = acc.astype(o_ref.dtype)

    return kernel


def _valid_conv2d_stride1_pallas(x_pad, w):
    """VALID stride-1 conv on an already spatially padded NCHW input.

    x_pad: (B, C, Hp, Wp) float, w: (O, C, kh, kw)
    returns (B, O, Hp - kh + 1, Wp - kw + 1) float32
    """
    B, C, Hp, Wp = x_pad.shape
    O, Cw, kh, kw = w.shape
    assert Cw == C
    H_out = Hp - kh + 1
    W_out = Wp - kw + 1

    # ---- tiling / padding parameters --------------------------------------
    # 16-row padding = native bf16 sublane packing for the MXU operands.
    c_pad = _round_up(C, 16)
    o_pad = _round_up(O, 16)
    n_valid = H_out * Wp                               # flattened output (incl. kw-1 cropped cols)
    n_tile = min(_n_tile_cap(), _round_up(n_valid, 128))
    nt = -(-n_valid // n_tile)
    n_total = nt * n_tile
    max_off = (kh - 1) * Wp + (kw - 1)
    w_len = _round_up(n_tile + max_off, 128)           # window = tile + halo
    l_pad = max(Hp * Wp, (nt - 1) * n_tile + w_len)

    # ---- operands: bf16 MXU inputs, zero-pad channels/outputs -------------
    xb = x_pad.astype(jnp.bfloat16)
    xb = jnp.pad(xb, ((0, 0), (0, c_pad - C), (0, 0), (0, 0)))
    x_flat = xb.reshape(B, c_pad, Hp * Wp)
    x_flat = jnp.pad(x_flat, ((0, 0), (0, 0), (0, l_pad - Hp * Wp)))
    if nt == 1:
        # Single spatial tile: no overlapping-window restack needed.
        x_win = x_flat[:, :, :w_len]
    else:
        # Overlapping flattened windows, one per (batch, spatial-tile) grid step.
        x_win = jnp.stack(
            [x_flat[:, :, t * n_tile: t * n_tile + w_len] for t in range(nt)], axis=1
        ).reshape(B * nt, c_pad, w_len)

    wb = jnp.pad(w.astype(jnp.bfloat16),
                 ((0, o_pad - O), (0, c_pad - C), (0, 0), (0, 0)))
    w_taps = wb.transpose(2, 3, 0, 1).reshape(kh * kw, o_pad, c_pad)
    offsets = tuple(i * Wp + j for i in range(kh) for j in range(kw))

    # ---- VMEM budget (double-buffered input/output + resident weights) ----
    est = (2 * c_pad * w_len * 2
           + 2 * kh * kw * o_pad * c_pad * 2
           + 3 * o_pad * n_tile * 4)
    vmem_limit = int(min(max(4 * est, 16 * 2 ** 20), 48 * 2 ** 20))

    # Advisory cost so XLA schedules neighbours sensibly around the call.
    cost = pl.CostEstimate(
        flops=2 * B * nt * o_pad * c_pad * kh * kw * n_tile,
        transcendentals=0,
        bytes_accessed=(B * nt * c_pad * w_len * 2
                        + kh * kw * o_pad * c_pad * 2
                        + B * nt * o_pad * n_tile * 4),
    )

    out = pl.pallas_call(
        _make_tap_matmul_kernel(offsets, n_tile),
        out_shape=jax.ShapeDtypeStruct((B * nt, o_pad, n_tile), jnp.float32),
        grid_spec=pltpu.PrefetchScalarGridSpec(
            num_scalar_prefetch=0,
            grid=(B * nt,),
            in_specs=[
                pl.BlockSpec((1, c_pad, w_len), lambda g: (g, 0, 0)),
                pl.BlockSpec((kh * kw, o_pad, c_pad), lambda g: (0, 0, 0)),  # resident
            ],
            out_specs=pl.BlockSpec((1, o_pad, n_tile), lambda g: (g, 0, 0)),
        ),
        compiler_params=pltpu.CompilerParams(
            dimension_semantics=("parallel",),
            vmem_limit_bytes=vmem_limit,
        ),
        cost_estimate=cost,
    )(x_win, w_taps)

    out = out.reshape(B, nt, o_pad, n_tile).transpose(0, 2, 1, 3)
    out = out.reshape(B, o_pad, n_total)[:, :O, :n_valid]
    out = out.reshape(B, O, H_out, Wp)[:, :, :, :W_out]
    return out


# ------------------------------- JAX glue ----------------------------------- #
def _phase_decompose_strided(x_pad, w, s):
    """Rewrite a stride-s VALID conv as a stride-1 VALID conv by stacking the
    s*s input phases on the channel axis (no k^2 data blow-up)."""
    B, C, Hp, Wp = x_pad.shape
    O, _, k, _ = w.shape
    H_out = (Hp - k) // s + 1
    W_out = (Wp - k) // s + 1
    kk = -(-k // s)                           # ceil(k / s)
    A = H_out + kk - 1
    Bw = W_out + kk - 1
    xp = x_pad[:, :, :min(Hp, s * A), :min(Wp, s * Bw)]
    xp = jnp.pad(xp, ((0, 0), (0, 0),
                      (0, s * A - xp.shape[2]), (0, s * Bw - xp.shape[3])))
    x_stack = xp.reshape(B, C, A, s, Bw, s).transpose(0, 1, 3, 5, 2, 4)
    x_stack = x_stack.reshape(B, C * s * s, A, Bw)

    wp = jnp.pad(w, ((0, 0), (0, 0), (0, s * kk - k), (0, s * kk - k)))
    w_exp = wp.reshape(O, C, kk, s, kk, s).transpose(0, 1, 3, 5, 2, 4)
    w_exp = w_exp.reshape(O, C * s * s, kk, kk)
    return x_stack, w_exp


def _nearest_interpolate(x, scale):
    """F.interpolate(x, scale_factor=scale, mode='nearest') on NCHW input."""
    B, C, H, W = x.shape
    H_new = int(math.floor(H * scale))
    W_new = int(math.floor(W * scale))
    h_idx = jnp.minimum((jnp.arange(H_new) * H) // H_new, H - 1)
    w_idx = jnp.minimum((jnp.arange(W_new) * W) // W_new, W - 1)
    return x[:, :, h_idx, :][:, :, :, w_idx]


@partial(jax.jit, static_argnames=("upsample_ratio",))
def conv_forward(x, kernel_weights, upsample_ratio=1.0):
    """Forward pass of the PyTorch `Conv` module. x: (B, C_in, H, W) NCHW."""
    _, _, k, _ = kernel_weights.shape
    p = k // 2
    if upsample_ratio > 1.0:
        x = _nearest_interpolate(x, upsample_ratio)
        xp = jnp.pad(x, ((0, 0), (0, 0), (p, p), (p, p)))
        return _valid_conv2d_stride1_pallas(xp, kernel_weights)
    elif upsample_ratio < 1.0:
        s = int(1 / upsample_ratio)          # matches PyTorch int() truncation
        xp = jnp.pad(x, ((0, 0), (0, 0), (p, p), (p, p)))
        if s <= 1:
            return _valid_conv2d_stride1_pallas(xp, kernel_weights)
        x_stack, w_exp = _phase_decompose_strided(xp, kernel_weights, s)
        return _valid_conv2d_stride1_pallas(x_stack, w_exp)
    else:
        xp = jnp.pad(x, ((0, 0), (0, 0), (p, p), (p, p)))
        return _valid_conv2d_stride1_pallas(xp, kernel_weights)


# --------------------------- parameter init --------------------------------- #
def init_kernel_weights(key, ch_out, ch_in, kernel_sz):
    # kaiming_normal_, nonlinearity='relu', mode='fan_in'
    fan_in = ch_in * kernel_sz * kernel_sz
    std = math.sqrt(2.0) / math.sqrt(fan_in)
    return std * jax.random.normal(key, (ch_out, ch_in, kernel_sz, kernel_sz),
                                   dtype=jnp.float32)


# --------------------------------- demo -------------------------------------- #
if __name__ == "__main__":
    key = jax.random.PRNGKey(0)
    kx, kwk = jax.random.split(key)

    B, C_IN, C_OUT, H, W, K = 2, 4, 8, 16, 16, 3
    x = jax.random.normal(kx, (B, C_IN, H, W), dtype=jnp.float32)
    w = init_kernel_weights(kwk, C_OUT, C_IN, K)

    # reference uses the same bf16-rounded operands as the kernel (f32 accumulate)
    xr = x.astype(jnp.bfloat16).astype(jnp.float32)
    wr = w.astype(jnp.bfloat16).astype(jnp.float32)

    def conv_ref(xin, win, stride, pad):
        return jax.lax.conv_general_dilated(
            xin, win, window_strides=(stride, stride),
            padding=[(pad, pad), (pad, pad)],
            dimension_numbers=("NCHW", "OIHW", "NCHW"),
            precision=jax.lax.Precision.HIGHEST,
            preferred_element_type=jnp.float32)

    # 1) main case: upsample_ratio == 1.0 (same-padding stride-1 conv)
    out = jax.block_until_ready(conv_forward(x, w, upsample_ratio=1.0))
    assert out.shape == (B, C_OUT, H, W), out.shape
    ref = conv_ref(xr, wr, 1, K // 2)
    assert jnp.allclose(out, ref, atol=5e-3, rtol=5e-3), \
        float(jnp.max(jnp.abs(out - ref)))

    # 2) downsample branch (stride-2 conv via phase decomposition)
    out_ds = jax.block_until_ready(conv_forward(x, w, upsample_ratio=0.5))
    assert out_ds.shape == (B, C_OUT, H // 2, W // 2), out_ds.shape
    ref_ds = conv_ref(xr, wr, 2, K // 2)
    assert jnp.allclose(out_ds, ref_ds, atol=5e-3, rtol=5e-3)

    # 3) upsample branch (nearest x2 then stride-1 conv)
    out_us = jax.block_until_ready(conv_forward(x, w, upsample_ratio=2.0))
    assert out_us.shape == (B, C_OUT, 2 * H, 2 * W), out_us.shape
    ref_us = conv_ref(_nearest_interpolate(xr, 2.0), wr, 1, K // 2)
    assert jnp.allclose(out_us, ref_us, atol=5e-3, rtol=5e-3)

    print("KERNEL_OK")
</pallas_src>

<mosaic_0001>
module attributes {stable_mosaic.version = 11 : i64} {
  func.func @kernel(%arg0: i32, %arg1: memref<1x16x512xbf16, #tpu.memory_space<vmem>>, %arg2: memref<9x16x16xbf16, #tpu.memory_space<vmem>>, %arg3: memref<1x16x384xf32, #tpu.memory_space<vmem>>) attributes {dimension_semantics = [#tpu.dimension_semantics<parallel>], iteration_bounds = array<i64: 2>, scalar_prefetch = 0 : i64, scratch_operands = 0 : i64, tpu.core_type = #tpu.core_type<tc>, window_params = [{transform_indices = @transform_0, window_bounds = array<i64: 1, 16, 512>}, {pipeline_mode = #tpu.pipeline_mode<synchronous>, transform_indices = @transform_1, window_bounds = array<i64: 9, 16, 16>}, {transform_indices = @transform_2, window_bounds = array<i64: 1, 16, 384>}]} {
    %c0 = arith.constant 0 : index
    %c0_0 = arith.constant 0 : index
    %c0_1 = arith.constant 0 : index
    %0 = vector.load %arg1[%c0, %c0_0, %c0_1] : memref<1x16x512xbf16, #tpu.memory_space<vmem>>, vector<1x16x512xbf16>
    %1 = vector.shape_cast %0 : vector<1x16x512xbf16> to vector<16x512xbf16>
    %cst = arith.constant 0.000000e+00 : f32
    %2 = vector.broadcast %cst : f32 to vector<16x384xf32>
    %3 = vector.extract_strided_slice %1 {offsets = [0, 0], sizes = [16, 384], strides = [1, 1]} : vector<16x512xbf16> to vector<16x384xbf16>
    %c0_2 = arith.constant 0 : index
    %c0_3 = arith.constant 0 : index
    %c0_4 = arith.constant 0 : index
    %4 = vector.load %arg2[%c0_2, %c0_3, %c0_4] : memref<9x16x16xbf16, #tpu.memory_space<vmem>>, vector<1x16x16xbf16>
    %5 = vector.shape_cast %4 : vector<1x16x16xbf16> to vector<16x16xbf16>
    %cst_5 = arith.constant dense<0.000000e+00> : vector<16x384xf32>
    %6 = tpu.matmul %5, %3, %cst_5 {dimension_numbers = #tpu.dot_dimension_numbers<[1], [0], [0], [1], [0, 0, 1, 1], [], []>} : vector<16x16xbf16>, vector<16x384xbf16>, vector<16x384xf32> -> vector<16x384xf32>
    %7 = arith.addf %2, %6 : vector<16x384xf32>
    %8 = vector.extract_strided_slice %1 {offsets = [0, 1], sizes = [16, 384], strides = [1, 1]} : vector<16x512xbf16> to vector<16x384xbf16>
    %c1 = arith.constant 1 : index
    %c0_6 = arith.constant 0 : index
    %c0_7 = arith.constant 0 : index
    %9 = vector.load %arg2[%c1, %c0_6, %c0_7] : memref<9x16x16xbf16, #tpu.memory_space<vmem>>, vector<1x16x16xbf16>
    %10 = vector.shape_cast %9 : vector<1x16x16xbf16> to vector<16x16xbf16>
    %cst_8 = arith.constant dense<0.000000e+00> : vector<16x384xf32>
    %11 = tpu.matmul %10, %8, %cst_8 {dimension_numbers = #tpu.dot_dimension_numbers<[1], [0], [0], [1], [0, 0, 1, 1], [], []>} : vector<16x16xbf16>, vector<16x384xbf16>, vector<16x384xf32> -> vector<16x384xf32>
    %12 = arith.addf %7, %11 : vector<16x384xf32>
    %13 = vector.extract_strided_slice %1 {offsets = [0, 2], sizes = [16, 384], strides = [1, 1]} : vector<16x512xbf16> to vector<16x384xbf16>
    %c2 = arith.constant 2 : index
    %c0_9 = arith.constant 0 : index
    %c0_10 = arith.constant 0 : index
    %14 = vector.load %arg2[%c2, %c0_9, %c0_10] : memref<9x16x16xbf16, #tpu.memory_space<vmem>>, vector<1x16x16xbf16>
    %15 = vector.shape_cast %14 : vector<1x16x16xbf16> to vector<16x16xbf16>
    %cst_11 = arith.constant dense<0.000000e+00> : vector<16x384xf32>
    %16 = tpu.matmul %15, %13, %cst_11 {dimension_numbers = #tpu.dot_dimension_numbers<[1], [0], [0], [1], [0, 0, 1, 1], [], []>} : vector<16x16xbf16>, vector<16x384xbf16>, vector<16x384xf32> -> vector<16x384xf32>
    %17 = arith.addf %12, %16 : vector<16x384xf32>
    %18 = vector.extract_strided_slice %1 {offsets = [0, 18], sizes = [16, 384], strides = [1, 1]} : vector<16x512xbf16> to vector<16x384xbf16>
    %c3 = arith.constant 3 : index
    %c0_12 = arith.constant 0 : index
    %c0_13 = arith.constant 0 : index
    %19 = vector.load %arg2[%c3, %c0_12, %c0_13] : memref<9x16x16xbf16, #tpu.memory_space<vmem>>, vector<1x16x16xbf16>
    %20 = vector.shape_cast %19 : vector<1x16x16xbf16> to vector<16x16xbf16>
    %cst_14 = arith.constant dense<0.000000e+00> : vector<16x384xf32>
    %21 = tpu.matmul %20, %18, %cst_14 {dimension_numbers = #tpu.dot_dimension_numbers<[1], [0], [0], [1], [0, 0, 1, 1], [], []>} : vector<16x16xbf16>, vector<16x384xbf16>, vector<16x384xf32> -> vector<16x384xf32>
    %22 = arith.addf %17, %21 : vector<16x384xf32>
    %23 = vector.extract_strided_slice %1 {offsets = [0, 19], sizes = [16, 384], strides = [1, 1]} : vector<16x512xbf16> to vector<16x384xbf16>
    %c4 = arith.constant 4 : index
    %c0_15 = arith.constant 0 : index
    %c0_16 = arith.constant 0 : index
    %24 = vector.load %arg2[%c4, %c0_15, %c0_16] : memref<9x16x16xbf16, #tpu.memory_space<vmem>>, vector<1x16x16xbf16>
    %25 = vector.shape_cast %24 : vector<1x16x16xbf16> to vector<16x16xbf16>
    %cst_17 = arith.constant dense<0.000000e+00> : vector<16x384xf32>
    %26 = tpu.matmul %25, %23, %cst_17 {dimension_numbers = #tpu.dot_dimension_numbers<[1], [0], [0], [1], [0, 0, 1, 1], [], []>} : vector<16x16xbf16>, vector<16x384xbf16>, vector<16x384xf32> -> vector<16x384xf32>
    %27 = arith.addf %22, %26 : vector<16x384xf32>
    %28 = vector.extract_strided_slice %1 {offsets = [0, 20], sizes = [16, 384], strides = [1, 1]} : vector<16x512xbf16> to vector<16x384xbf16>
    %c5 = arith.constant 5 : index
    %c0_18 = arith.constant 0 : index
    %c0_19 = arith.constant 0 : index
    %29 = vector.load %arg2[%c5, %c0_18, %c0_19] : memref<9x16x16xbf16, #tpu.memory_space<vmem>>, vector<1x16x16xbf16>
    %30 = vector.shape_cast %29 : vector<1x16x16xbf16> to vector<16x16xbf16>
    %cst_20 = arith.constant dense<0.000000e+00> : vector<16x384xf32>
    %31 = tpu.matmul %30, %28, %cst_20 {dimension_numbers = #tpu.dot_dimension_numbers<[1], [0], [0], [1], [0, 0, 1, 1], [], []>} : vector<16x16xbf16>, vector<16x384xbf16>, vector<16x384xf32> -> vector<16x384xf32>
    %32 = arith.addf %27, %31 : vector<16x384xf32>
    %33 = vector.extract_strided_slice %1 {offsets = [0, 36], sizes = [16, 384], strides = [1, 1]} : vector<16x512xbf16> to vector<16x384xbf16>
    %c6 = arith.constant 6 : index
    %c0_21 = arith.constant 0 : index
    %c0_22 = arith.constant 0 : index
    %34 = vector.load %arg2[%c6, %c0_21, %c0_22] : memref<9x16x16xbf16, #tpu.memory_space<vmem>>, vector<1x16x16xbf16>
    %35 = vector.shape_cast %34 : vector<1x16x16xbf16> to vector<16x16xbf16>
    %cst_23 = arith.constant dense<0.000000e+00> : vector<16x384xf32>
    %36 = tpu.matmul %35, %33, %cst_23 {dimension_numbers = #tpu.dot_dimension_numbers<[1], [0], [0], [1], [0, 0, 1, 1], [], []>} : vector<16x16xbf16>, vector<16x384xbf16>, vector<16x384xf32> -> vector<16x384xf32>
    %37 = arith.addf %32, %36 : vector<16x384xf32>
    %38 = vector.extract_strided_slice %1 {offsets = [0, 37], sizes = [16, 384], strides = [1, 1]} : vector<16x512xbf16> to vector<16x384xbf16>
    %c7 = arith.constant 7 : index
    %c0_24 = arith.constant 0 : index
    %c0_25 = arith.constant 0 : index
    %39 = vector.load %arg2[%c7, %c0_24, %c0_25] : memref<9x16x16xbf16, #tpu.memory_space<vmem>>, vector<1x16x16xbf16>
    %40 = vector.shape_cast %39 : vector<1x16x16xbf16> to vector<16x16xbf16>
    %cst_26 = arith.constant dense<0.000000e+00> : vector<16x384xf32>
    %41 = tpu.matmul %40, %38, %cst_26 {dimension_numbers = #tpu.dot_dimension_numbers<[1], [0], [0], [1], [0, 0, 1, 1], [], []>} : vector<16x16xbf16>, vector<16x384xbf16>, vector<16x384xf32> -> vector<16x384xf32>
    %42 = arith.addf %37, %41 : vector<16x384xf32>
    %43 = vector.extract_strided_slice %1 {offsets = [0, 38], sizes = [16, 384], strides = [1, 1]} : vector<16x512xbf16> to vector<16x384xbf16>
    %c8 = arith.constant 8 : index
    %c0_27 = arith.constant 0 : index
    %c0_28 = arith.constant 0 : index
    %44 = vector.load %arg2[%c8, %c0_27, %c0_28] : memref<9x16x16xbf16, #tpu.memory_space<vmem>>, vector<1x16x16xbf16>
    %45 = vector.shape_cast %44 : vector<1x16x16xbf16> to vector<16x16xbf16>
    %cst_29 = arith.constant dense<0.000000e+00> : vector<16x384xf32>
    %46 = tpu.matmul %45, %43, %cst_29 {dimension_numbers = #tpu.dot_dimension_numbers<[1], [0], [0], [1], [0, 0, 1, 1], [], []>} : vector<16x16xbf16>, vector<16x384xbf16>, vector<16x384xf32> -> vector<16x384xf32>
    %47 = arith.addf %42, %46 : vector<16x384xf32>
    %c0_30 = arith.constant 0 : index
    %c0_31 = arith.constant 0 : index
    %c0_32 = arith.constant 0 : index
    %48 = vector.load %arg3[%c0_30, %c0_31, %c0_32] : memref<1x16x384xf32, #tpu.memory_space<vmem>>, vector<1x16x384xf32>
    %49 = vector.shape_cast %48 : vector<1x16x384xf32> to vector<16x384xf32>
    %50 = vector.shape_cast %47 : vector<16x384xf32> to vector<1x16x384xf32>
    tpu.vector_store %arg3[%c0_30, %c0_31, %c0_32], %50 {strides = array<i32>} : memref<1x16x384xf32, #tpu.memory_space<vmem>>, vector<1x16x384xf32>,
    return
  }
  func.func @transform_0(%arg0: i32) -> (i32, i32, i32) {
    %c0_i32 = arith.constant 0 : i32
    %c0_i32_0 = arith.constant 0 : i32
    %c0_i32_1 = arith.constant 0 : i32
    return %arg0, %c0_i32, %c0_i32_0 : i32, i32, i32
  }
  func.func @transform_1(%arg0: i32) -> (i32, i32, i32) {
    %c0_i32 = arith.constant 0 : i32
    %c0_i32_0 = arith.constant 0 : i32
    %c0_i32_1 = arith.constant 0 : i32
    %c0_i32_2 = arith.constant 0 : i32
    return %c0_i32, %c0_i32_0, %c0_i32_1 : i32, i32, i32
  }
  func.func @transform_2(%arg0: i32) -> (i32, i32, i32) {
    %c0_i32 = arith.constant 0 : i32
    %c0_i32_0 = arith.constant 0 : i32
    %c0_i32_1 = arith.constant 0 : i32
    return %arg0, %c0_i32, %c0_i32_0 : i32, i32, i32
  }
}

</mosaic_0001>

<bundles_post_ra>
// kernel: conv_forward.1
= control target key start
LH: loop header
LB: loop body
LE: loop exit
PB: predicated region body
PF: predicated region fallthrough
CT: control target
= control target key end

     0   :  { %s1509_s9 = smov 0   ;;  %s1643_s0 = inlined_call_operand.vmem [shape: bf16[2,16,512], index: 0, kind: input, shape index: {}]   ;;  %s1644_s1 = inlined_call_operand.vmem [shape: bf16[9,16,16], index: 1, kind: input, shape index: {}]   ;;  %s1645_s2 = inlined_call_operand.vmem [shape: f32[2,16,384], index: 2, kind: output, shape index: {}]  }
   0x1 LB: > { %s1246_s10 = sadd.s32 4294967295, %s1481_s9   ;;  %p1250_p0 = scmp.ge.s32.totalorder %s1481_s9, 1  ;;  %s1481_s9 = sphi %s1509_s9, %s12_s9  }
   0x2   : > { %p112_p1 = scmp.lt.s32.totalorder %s1481_s9, 3 }
   0x4   : > { %p113_p2 = pnand %p1250_p0, %p112_p1 }
   0x5   : > { %p134_p3 = scmp.lt.s32.totalorder (!%p113_p2), %s1246_s10, 1  ;;  %v1483_v0 = vmov (!%p113_p2), 0.0   ;;  %vm1484_vm0 = vmmov (!%p113_p2), 0   ;;  %v1485_v1 = vmov (!%p113_p2), 0   ;;  %s1486_s15 = smov (!%p113_p2), 127   ;;  %vm183_vm1 = vcmask (!%p113_p2), 1039360  }
   0x6   : > { %116 = sbr.rel (%p113_p2) target bundleno = 453 (0x1c5), region = 28  ;;  %1322 = vmatprep.subr.bf16.mxu1 (!%p113_p2), %v1483_v0  ;;  %1324 = vmatprep.mubr.msk.bf16.mxu1 (!%p113_p2), %vm1484_vm0, %v1483_v0  ;;  %s1487_s16 = smov (!%p113_p2), 126   ;;  %v1466_v13 = vld [vmem:[%s1644_s1 + $0x8] sm:$0xff] (!%p113_p2)   ;;  %vm190_vm2 = vcmask (!%p113_p2), 130048   ;;  %vm389_vm3 = vcmask (!%p113_p2), 1031168   ;;  %v1467_v19 = vld [vmem:[%s1644_s1] sm:$0xff] (!%p113_p2)  }
   0x7   : > { %226 = vmatprep.mubr.bf16.mxu0 (!%p113_p2), %v1485_v1  ;;  %s1488_s17 = smov (!%p113_p2), 110   ;;  %s1489_s18 = smov (!%p113_p2), 109   ;;  %vm505_vm4 = vcmask (!%p113_p2), 900096   ;;  %v1468_v27 = vld [vmem:[%s1644_s1 + $0x10] sm:$0xff] (!%p113_p2)   ;;  %vm621_vm5 = vcmask (!%p113_p2), 891904   ;;  %v1469_v35 = vld [vmem:[%s1644_s1 + $0x18] sm:$0xff] (!%p113_p2)  }
   0x8   : > { %s1490_s19 = smov (!%p113_p2), 108   ;;  %s1491_s20 = smov (!%p113_p2), 92   ;;  %vm737_vm6 = vcmask (!%p113_p2), 883712   ;;  %v1470_v43 = vld [vmem:[%s1644_s1 + $0x20] sm:$0xff] (!%p113_p2)   ;;  %vm853_vm7 = vcmask (!%p113_p2), 752640   ;;  %v1471_v51 = vld [vmem:[%s1644_s1 + $0x28] sm:$0xff] (!%p113_p2)  }
   0x9   : > { %s1492_s21 = smov (!%p113_p2), 91   ;;  %s1493_s22 = smov (!%p113_p2), 90   ;;  %vm969_vm8 = vcmask (!%p113_p2), 744448   ;;  %v1472_v59 = vld [vmem:[%s1644_s1 + $0x30] sm:$0xff] (!%p113_p2)   ;;  %vm1085_vm9 = vcmask (!%p113_p2), 736256  }
   0xd   : > { %s1647_s10 = smov (!%p134_p3, %s1246_s10), 1 }
   0xe   : > { %s1303_s11 = sshll.u32 %s1647_s10, 5 }
   0xf   : > { %s138_s14 = scalar_lea.vmem %s1643_s0, %s1303_s11 }
  0x10   : > { %v1460_v2 = vld [vmem:[%s138_s14 + $0x4] ss:$16 sps:$4 sm:$0xff]   ;;  %v1527_v3 = vld [vmem:[%s138_s14] ss:$16 sps:$4 sm:$0xff]   ;;  %v1463_v4 = vld [vmem:[%s138_s14 + $0x8] ss:$16 sps:$4 sm:$0xff]  }
  0x11   : > { %177 = vrot.lane.b32.xlu0 %v1460_v2, %s1486_s15  ;;  %v1465_v5 = vld [vmem:[%s138_s14 + $0xc] ss:$16 sps:$4 sm:$0xff]   ;;  %175 = vrot.lane.b32.xlu1 %v1527_v3, %s1486_s15 }
  0x15   : > { %179 = vrot.lane.b32.xlu0 %v1463_v4, %s1486_s15  ;;  %181 = vrot.lane.b32.xlu1 %v1465_v5, %s1486_s15  ;;  %s1440_s15 = smul.u32 48, %s1647_s10 }
  0x19   : > { %383 = vrot.lane.b32.xlu0 %v1460_v2, %s1487_s16  ;;  %385 = vrot.lane.b32.xlu1 %v1463_v4, %s1487_s16 }
  0x1d   : > { %381 = vrot.lane.b32.xlu0 %v1527_v3, %s1487_s16  ;;  %387 = vrot.lane.b32.xlu1 %v1465_v5, %s1487_s16 }
  0x21   : > { %499 = vrot.lane.b32.xlu0 %v1460_v2, %s1488_s17  ;;  %501 = vrot.lane.b32.xlu1 %v1463_v4, %s1488_s17 }
  0x25   : > { %497 = vrot.lane.b32.xlu0 %v1527_v3, %s1488_s17  ;;  %503 = vrot.lane.b32.xlu1 %v1465_v5, %s1488_s17 }
  0x29   : > { %615 = vrot.lane.b32.xlu0 %v1460_v2, %s1489_s18  ;;  %617 = vrot.lane.b32.xlu1 %v1463_v4, %s1489_s18 }
  0x2d   : > { %613 = vrot.lane.b32.xlu0 %v1527_v3, %s1489_s18  ;;  %619 = vrot.lane.b32.xlu1 %v1465_v5, %s1489_s18  ;;  %s143_s18 = scalar_lea.vmem %s1645_s2, %s1440_s15 }
  0x31   : > { %731 = vrot.lane.b32.xlu0 %v1460_v2, %s1490_s19  ;;  %733 = vrot.lane.b32.xlu1 %v1463_v4, %s1490_s19 }
  0x35   : > { %729 = vrot.lane.b32.xlu0 %v1527_v3, %s1490_s19  ;;  %735 = vrot.lane.b32.xlu1 %v1465_v5, %s1490_s19 }
  0x39   : > { %847 = vrot.lane.b32.xlu0 %v1460_v2, %s1491_s20  ;;  %849 = vrot.lane.b32.xlu1 %v1463_v4, %s1491_s20 }
  0x3d   : > { %845 = vrot.lane.b32.xlu0 %v1527_v3, %s1491_s20  ;;  %851 = vrot.lane.b32.xlu1 %v1465_v5, %s1491_s20 }
  0x41   : > { %963 = vrot.lane.b32.xlu0 %v1460_v2, %s1492_s21  ;;  %965 = vrot.lane.b32.xlu1 %v1463_v4, %s1492_s21 }
  0x45   : > { %961 = vrot.lane.b32.xlu0 %v1527_v3, %s1492_s21  ;;  %967 = vrot.lane.b32.xlu1 %v1465_v5, %s1492_s21 }
  0x49   : > { %1079 = vrot.lane.b32.xlu0 %v1460_v2, %s1493_s22  ;;  %1081 = vrot.lane.b32.xlu1 %v1463_v4, %s1493_s22 }
  0x4d   : > { %1077 = vrot.lane.b32.xlu0 %v1527_v3, %s1493_s22  ;;  %1083 = vrot.lane.b32.xlu1 %v1465_v5, %s1493_s22  ;;  %v1473_v5 = vld [vmem:[%s1644_s1 + $0x38] sm:$0xff]  }
  0x83   : > { %v178_v6 = vpop.permute.xlu0 %177  ;;  %v176_v7 = vpop.permute.xlu1 %175 }
  0x84   : > { %v184_v12 = vsel %vm183_vm1, %v176_v7, %v178_v6 }
  0x87   : > { %v180_v8 = vpop.permute.xlu0 %179  ;;  %v182_v9 = vpop.permute.xlu1 %181 }
  0x88   : > { %v185_v10 = vsel %vm183_vm1, %v178_v6, %v180_v8  ;;  %v186_v11 = vsel %vm183_vm1, %v180_v8, %v182_v9  ;;  %v1474_v8 = vld [vmem:[%s1644_s1 + $0x40] sm:$0xff]  }
  0x89   : > { %194 = vmatprep.subr.bf16.mxu0 %v185_v10  ;;  %1323 = vmatpush3.bf16.msra.mxu1 %v186_v11 }
  0x8a   : > { %195 = vmatpush1.bf16.msra.mxu0 %v184_v12  ;;  %1328 = vmatprep.subr.bf16.mxu1 %v1483_v0 }
  0x8b   : > { %289 = vmatprep.subr.bf16.mxu0 %v1460_v2  ;;  %v384_v14 = vpop.permute.xlu0 %383  ;;  %v386_v15 = vpop.permute.xlu1 %385 }
  0x8c   : > { %1325 = vmatmul.mubr.msk.bf16.vlgmr.msra.gmra.mrb[0].mxu1 %vm190_vm2, %v1466_v13  ;;  %v391_v16 = vsel %vm389_vm3, %v384_v14, %v386_v15 }
  0x8d   : > { %1261 = vmatmul.mubr.msk.bf16.vlgmr.msra.gmra.mrb[0].mxu0 %vm190_vm2, %v1466_v13  ;;  %1329 = vmatpush3.bf16.msra.mxu1 %v1463_v4 }
  0x8e   : > { %290 = vmatpush1.bf16.msra.mxu0 %v1527_v3  ;;  %1330 = vmatprep.mubr.msk.bf16.mxu1 %vm1484_vm0, %v1483_v0 }
  0x8f   : > { %399 = vmatprep.subr.bf16.mxu0 %v391_v16  ;;  %1334 = vmatprep.subr.bf16.mxu1 %v1483_v0  ;;  %v382_v17 = vpop.permute.xlu0 %381  ;;  %v388_v18 = vpop.permute.xlu1 %387 }
  0x90   : > { %321 = vmatprep.mubr.bf16.mxu0 %v1485_v1  ;;  %v390_v20 = vsel %vm389_vm3, %v382_v17, %v384_v14  ;;  %v392_v21 = vsel %vm389_vm3, %v386_v15, %v388_v18 }
  0x93   : > { %v500_v22 = vpop.permute.xlu0 %499  ;;  %v502_v23 = vpop.permute.xlu1 %501 }
  0x94   : > { %v507_v24 = vsel %vm505_vm4, %v500_v22, %v502_v23 }
  0x97   : > { %v498_v25 = vpop.permute.xlu0 %497  ;;  %v504_v26 = vpop.permute.xlu1 %503 }
  0x98   : > { %1331 = vmatmul.mubr.msk.bf16.vlgmr.msra.gmra.mrb[0].mxu1 %vm190_vm2, %v1467_v19  ;;  %v506_v28 = vsel %vm505_vm4, %v498_v25, %v500_v22  ;;  %v508_v29 = vsel %vm505_vm4, %v502_v23, %v504_v26 }
  0x99   : > { %1264 = vmatmul.mubr.msk.bf16.vlgmr.msra.gmra.mrb[0].mxu0 %vm190_vm2, %v1467_v19  ;;  %1335 = vmatpush3.bf16.msra.mxu1 %v392_v21 }
  0x9a   : > { %400 = vmatpush1.bf16.msra.mxu0 %v390_v20  ;;  %1336 = vmatprep.mubr.msk.bf16.mxu1 %vm1484_vm0, %v1483_v0 }
  0x9b   : > { %515 = vmatprep.subr.bf16.mxu0 %v507_v24  ;;  %1340 = vmatprep.subr.bf16.mxu1 %v1483_v0  ;;  %v616_v30 = vpop.permute.xlu0 %615  ;;  %v618_v31 = vpop.permute.xlu1 %617 }
  0x9c   : > { %431 = vmatprep.mubr.bf16.mxu0 %v1485_v1  ;;  %v623_v32 = vsel %vm621_vm5, %v616_v30, %v618_v31 }
  0x9f   : > { %v614_v33 = vpop.permute.xlu0 %613  ;;  %v620_v34 = vpop.permute.xlu1 %619 }
  0xa0   : > { %v622_v36 = vsel %vm621_vm5, %v614_v33, %v616_v30  ;;  %v624_v37 = vsel %vm621_vm5, %v618_v31, %v620_v34 }
  0xa3   : > { %v732_v38 = vpop.permute.xlu0 %731  ;;  %v734_v39 = vpop.permute.xlu1 %733 }
  0xa4   : > { %1337 = vmatmul.mubr.msk.bf16.vlgmr.msra.gmra.mrb[0].mxu1 %vm190_vm2, %v1468_v27  ;;  %v739_v40 = vsel %vm737_vm6, %v732_v38, %v734_v39 }
  0xa5   : > { %1269 = vmatmul.mubr.msk.bf16.vlgmr.msra.gmra.mrb[0].mxu0 %vm190_vm2, %v1468_v27  ;;  %1341 = vmatpush3.bf16.msra.mxu1 %v508_v29 }
  0xa6   : > { %516 = vmatpush1.bf16.msra.mxu0 %v506_v28  ;;  %1342 = vmatprep.mubr.msk.bf16.mxu1 %vm1484_vm0, %v1483_v0 }
  0xa7   : > { %631 = vmatprep.subr.bf16.mxu0 %v623_v32  ;;  %1346 = vmatprep.subr.bf16.mxu1 %v1483_v0  ;;  %v730_v41 = vpop.permute.xlu0 %729  ;;  %v736_v42 = vpop.permute.xlu1 %735 }
  0xa8   : > { %547 = vmatprep.mubr.bf16.mxu0 %v1485_v1  ;;  %v738_v44 = vsel %vm737_vm6, %v730_v41, %v732_v38  ;;  %v740_v45 = vsel %vm737_vm6, %v734_v39, %v736_v42 }
  0xab   : > { %v848_v46 = vpop.permute.xlu0 %847  ;;  %v850_v47 = vpop.permute.xlu1 %849 }
  0xac   : > { %v855_v48 = vsel %vm853_vm7, %v848_v46, %v850_v47 }
  0xaf   : > { %v846_v49 = vpop.permute.xlu0 %845  ;;  %v852_v50 = vpop.permute.xlu1 %851 }
  0xb0   : > { %1343 = vmatmul.mubr.msk.bf16.vlgmr.msra.gmra.mrb[0].mxu1 %vm190_vm2, %v1469_v35  ;;  %v854_v52 = vsel %vm853_vm7, %v846_v49, %v848_v46  ;;  %v856_v53 = vsel %vm853_vm7, %v850_v47, %v852_v50 }
  0xb1   : > { %1274 = vmatmul.mubr.msk.bf16.vlgmr.msra.gmra.mrb[0].mxu0 %vm190_vm2, %v1469_v35  ;;  %1347 = vmatpush3.bf16.msra.mxu1 %v624_v37 }
  0xb2   : > { %632 = vmatpush1.bf16.msra.mxu0 %v622_v36  ;;  %1348 = vmatprep.mubr.msk.bf16.mxu1 %vm1484_vm0, %v1483_v0 }
  0xb3   : > { %747 = vmatprep.subr.bf16.mxu0 %v739_v40  ;;  %1352 = vmatprep.subr.bf16.mxu1 %v1483_v0  ;;  %v964_v54 = vpop.permute.xlu0 %963  ;;  %v966_v55 = vpop.permute.xlu1 %965 }
  0xb4   : > { %663 = vmatprep.mubr.bf16.mxu0 %v1485_v1  ;;  %v971_v56 = vsel %vm969_vm8, %v964_v54, %v966_v55 }
  0xb7   : > { %v962_v57 = vpop.permute.xlu0 %961  ;;  %v968_v58 = vpop.permute.xlu1 %967 }
  0xb8   : > { %v970_v60 = vsel %vm969_vm8, %v962_v57, %v964_v54  ;;  %v972_v61 = vsel %vm969_vm8, %v966_v55, %v968_v58 }
  0xbb   : > { %v1080_v62 = vpop.permute.xlu0 %1079  ;;  %v1082_v63 = vpop.permute.xlu1 %1081 }
  0xbc   : > { %1349 = vmatmul.mubr.msk.bf16.vlgmr.msra.gmra.mrb[0].mxu1 %vm190_vm2, %v1470_v43  ;;  %v1087_v2 = vsel %vm1085_vm9, %v1080_v62, %v1082_v63 }
  0xbd   : > { %1279 = vmatmul.mubr.msk.bf16.vlgmr.msra.gmra.mrb[0].mxu0 %vm190_vm2, %v1470_v43  ;;  %1353 = vmatpush3.bf16.msra.mxu1 %v740_v45 }
  0xbe   : > { %748 = vmatpush1.bf16.msra.mxu0 %v738_v44  ;;  %1354 = vmatprep.mubr.msk.bf16.mxu1 %vm1484_vm0, %v1483_v0 }
  0xbf   : > { %863 = vmatprep.subr.bf16.mxu0 %v855_v48  ;;  %1358 = vmatprep.subr.bf16.mxu1 %v1483_v0  ;;  %v1078_v3 = vpop.permute.xlu0 %1077  ;;  %v1084_v4 = vpop.permute.xlu1 %1083 }
  0xc0   : > { %779 = vmatprep.mubr.bf16.mxu0 %v1485_v1  ;;  %v1086_v6 = vsel %vm1085_vm9, %v1078_v3, %v1080_v62  ;;  %v1088_v7 = vsel %vm1085_vm9, %v1082_v63, %v1084_v4 }
  0xc8   : > { %1355 = vmatmul.mubr.msk.bf16.vlgmr.msra.gmra.mrb[0].mxu1 %vm190_vm2, %v1471_v51 }
  0xc9   : > { %1284 = vmatmul.mubr.msk.bf16.vlgmr.msra.gmra.mrb[0].mxu0 %vm190_vm2, %v1471_v51  ;;  %1359 = vmatpush3.bf16.msra.mxu1 %v856_v53 }
  0xca   : > { %864 = vmatpush1.bf16.msra.mxu0 %v854_v52  ;;  %1360 = vmatprep.mubr.msk.bf16.mxu1 %vm1484_vm0, %v1483_v0 }
  0xcb   : > { %979 = vmatprep.subr.bf16.mxu0 %v971_v56  ;;  %1364 = vmatprep.subr.bf16.mxu1 %v1483_v0 }
  0xcc   : > { %895 = vmatprep.mubr.bf16.mxu0 %v1485_v1 }
  0xd4   : > { %1361 = vmatmul.mubr.msk.bf16.vlgmr.msra.gmra.mrb[0].mxu1 %vm190_vm2, %v1472_v59 }
  0xd5   : > { %1289 = vmatmul.mubr.msk.bf16.vlgmr.msra.gmra.mrb[0].mxu0 %vm190_vm2, %v1472_v59  ;;  %1365 = vmatpush3.bf16.msra.mxu1 %v972_v61 }
  0xd6   : > { %980 = vmatpush1.bf16.msra.mxu0 %v970_v60  ;;  %1366 = vmatprep.mubr.msk.bf16.mxu1 %vm1484_vm0, %v1483_v0 }
  0xd7   : > { %1095 = vmatprep.subr.bf16.mxu0 %v1087_v2  ;;  %1370 = vmatprep.subr.bf16.mxu1 %v1483_v0 }
  0xd8   : > { %1011 = vmatprep.mubr.bf16.mxu0 %v1485_v1 }
  0xe0   : > { %1367 = vmatmul.mubr.msk.bf16.vlgmr.msra.gmra.mrb[0].mxu1 %vm190_vm2, %v1473_v5 }
  0xe1   : > { %1294 = vmatmul.mubr.msk.bf16.vlgmr.msra.gmra.mrb[0].mxu0 %vm190_vm2, %v1473_v5  ;;  %1371 = vmatpush3.bf16.msra.mxu1 %v1088_v7 }
  0xe2   : > { %1096 = vmatpush1.bf16.msra.mxu0 %v1086_v6  ;;  %1372 = vmatprep.mubr.msk.bf16.mxu1 %vm1484_vm0, %v1483_v0 }
  0xe3   : > { %1127 = vmatprep.mubr.bf16.mxu0 %v1485_v1 }
  0xec   : > { %1373 = vmatmul.mubr.msk.bf16.vlgmr.msra.gmra.mrb[0].mxu1 %vm190_vm2, %v1474_v8 }
  0xed   : > { %1299 = vmatmul.mubr.msk.bf16.vlgmr.msra.gmra.mrb[0].mxu0 %vm190_vm2, %v1474_v8 }
 0x1bf   : > { %v1172_v9 = vpop.f32.mrb[0].mxu1 }
 0x1c0   : > { %v1129_v10 = vpop.f32.mrb[0].mxu0  ;;  %1187 = vst [vmem:[%s143_s18 + $0x10] sm:$0xff] %v1172_v9  ;;  %v1374_v0 = vpop.f32.mrb[1].mxu1 }
 0x1c1   : > { %1185 = vst [vmem:[%s143_s18] sm:$0xff] %v1129_v10  ;;  %v1131_v11 = vpop.f32.mrb[1].mxu0  ;;  %v1175_v1 = vpop.f32.mrb[2].mxu1 }
 0x1c2   : > { %1186 = vst [vmem:[%s143_s18 + $0x8] sm:$0xff] %v1131_v11  ;;  %v1133_v12 = vpop.f32.mrb[2].mxu0  ;;  %1190 = vst [vmem:[%s143_s18 + $0x28] sm:$0xff] %v1175_v1  ;;  %v1375_v13 = vpop.f32.mrb[3].mxu1 }
 0x1c3   : > { %1188 = vst [vmem:[%s143_s18 + $0x18] sm:$0xff] %v1133_v12  ;;  %v1135_v14 = vpop.f32.mrb[3].mxu0 }
 0x1c4   : > { %1189 = vst [vmem:[%s143_s18 + $0x20] sm:$0xff] %v1135_v14 }
 0x1c5 PF: > { %s12_s9 = sadd.s32 1, %s1481_s9  }
 0x1c6   : > { %p9_p4 = scmp.ge.s32.totalorder %s12_s9, 4  }
 0x1c8   :  { %11 = sbr.rel (!%p9_p4) target bundleno = 1 (0x1), region = 66 }

</bundles_post_ra>
